<compile_context>
chip_gen: v7x
topology: tpu7x:2x2x1
jax: 0.10.0
libtpu: 0.0.40
codegen_flags: <defaults>
</compile_context>

<pallas_src>
import jax
import jax.numpy as jnp
from jax.experimental import pallas as pl
from jax.experimental.pallas import tpu as pltpu

_NEG = -1e30  # bias pad value for padded class columns (exp underflows to 0)


def _round_up(x, m):
    return ((x + m - 1) // m) * m


def _pick_tile_rows(n_cols, itemsize, budget_bytes=24 << 20, max_tm=512):
    """Rows per streamed adj tile so 2 double-buffered (TM, n_cols) tiles fit."""
    tm = budget_bytes // (2 * max(n_cols, 1) * itemsize)
    tm = int(max(8, min(max_tm, tm)))
    return (tm // 8) * 8


# ------------------------------ kernels ------------------------------------

def _log_softmax_rows(h2):
    m = jnp.max(h2, axis=1, keepdims=True)
    z = h2 - m
    lse = jnp.log(jnp.sum(jnp.exp(z), axis=1, keepdims=True))
    return z - lse


def _fused_kernel(x_ref, adj_ref, w1_ref, b1_ref, w2_ref, b2_ref, out_ref):
    # Whole forward in one kernel (single-tile graphs): adj read once,
    # intermediates never leave VMEM.
    s1 = jnp.dot(x_ref[...], w1_ref[...], preferred_element_type=jnp.float32)
    h1 = jnp.dot(adj_ref[...], s1.astype(adj_ref.dtype),
                 preferred_element_type=jnp.float32)
    h1 = jnp.maximum(h1 + b1_ref[...], 0.0)
    # TODO(synk): training-mode F.dropout (PRNG mask + 1/(1-p) scale) not
    # implemented; this matches the PyTorch module in eval mode only.
    s2 = jnp.dot(h1.astype(w2_ref.dtype), w2_ref[...],
                 preferred_element_type=jnp.float32)
    h2 = jnp.dot(adj_ref[...], s2.astype(adj_ref.dtype),
                 preferred_element_type=jnp.float32)
    h2 = h2 + b2_ref[...]          # padded class columns get -1e30 -> exp()==0
    out_ref[...] = _log_softmax_rows(h2).astype(out_ref.dtype)


def _xw_kernel(x_ref, w_ref, out_ref):
    # support = x_tile @ W   (MXU, f32 accumulation)
    out_ref[...] = jnp.dot(
        x_ref[...], w_ref[...], preferred_element_type=jnp.float32
    ).astype(out_ref.dtype)


def _layer1_kernel(adj_ref, s1_ref, b1_ref, w2_ref, out_ref):
    # h1_tile = relu(adj_tile @ support1 + b1) ;  out_tile = h1_tile @ W2
    h = jnp.dot(adj_ref[...], s1_ref[...], preferred_element_type=jnp.float32)
    h = jnp.maximum(h + b1_ref[...], 0.0)
    # TODO(synk): training-mode F.dropout not implemented (eval-mode identity).
    out_ref[...] = jnp.dot(
        h.astype(w2_ref.dtype), w2_ref[...], preferred_element_type=jnp.float32
    ).astype(out_ref.dtype)


def _layer2_kernel(adj_ref, s2_ref, b2_ref, out_ref):
    # logits_tile = adj_tile @ support2 + b2 ;  out = log_softmax(logits)
    h2 = jnp.dot(adj_ref[...], s2_ref[...], preferred_element_type=jnp.float32)
    h2 = h2 + b2_ref[...]          # padded class columns get -1e30 -> exp()==0
    out_ref[...] = _log_softmax_rows(h2).astype(out_ref.dtype)


# ------------------------------ wrapper -------------------------------------

def gcn_forward(x, adj, w1, b1, w2, b2, *,
                compute_dtype=jnp.bfloat16, tile_rows=None):
    N, F = x.shape
    H = w1.shape[1]
    C = w2.shape[1]
    cd = jnp.dtype(compute_dtype)
    f32 = jnp.float32

    Hp = _round_up(H, 128)   # lane-dense hidden dim
    Cp = _round_up(C, 128)   # lane-dense class dim

    if tile_rows is None:
        tile_rows = _pick_tile_rows(max(N, 128), cd.itemsize)
    TM = min(int(tile_rows), _round_up(N, 8))
    TM = max(8, (TM // 8) * 8)
    N_pad = _round_up(N, TM)
    n_tiles = N_pad // TM

    # Zero-pad once in the wrapper.  Padded adj rows/cols are zero so real
    # rows are unaffected; padded class-bias columns are -1e30 so they drop
    # out of the log-softmax normalizer.
    x_p = jnp.zeros((N_pad, F), cd).at[:N, :].set(x.astype(cd))
    adj_p = jnp.zeros((N_pad, N_pad), cd).at[:N, :N].set(adj.astype(cd))
    w1_p = jnp.zeros((F, Hp), cd).at[:, :H].set(w1.astype(cd))
    b1_p = jnp.zeros((1, Hp), f32).at[:, :H].set(b1.astype(f32).reshape(1, H))
    w2_p = jnp.zeros((Hp, Cp), cd).at[:H, :C].set(w2.astype(cd))
    b2_p = jnp.full((1, Cp), _NEG, f32).at[:, :C].set(b2.astype(f32).reshape(1, C))

    resident = lambda r, c: pl.BlockSpec((r, c), lambda i: (0, 0))

    if n_tiles == 1:
        # ---------------- fused single-tile path ----------------------------
        params = pltpu.CompilerParams(
            dimension_semantics=("arbitrary",),
            vmem_limit_bytes=48 << 20,
        )
        out_p = pl.pallas_call(
            _fused_kernel,
            out_shape=jax.ShapeDtypeStruct((N_pad, Cp), f32),
            grid=(1,),
            in_specs=[resident(N_pad, F), resident(N_pad, N_pad),
                      resident(F, Hp), resident(1, Hp),
                      resident(Hp, Cp), resident(1, Cp)],
            out_specs=resident(N_pad, Cp),
            compiler_params=params,
        )(x_p, adj_p, w1_p, b1_p, w2_p, b2_p)
        return out_p[:N, :C]

    # -------------------- multi-tile streaming path --------------------------
    params = pltpu.CompilerParams(
        dimension_semantics=("parallel",),       # megacore sharding on v7x
        vmem_limit_bytes=48 << 20,               # safe on v7x / v6e / v5e
    )
    row_tile = lambda cols: pl.BlockSpec((TM, cols), lambda i: (i, 0))

    # pass A: support1 = x @ W1   (stream x rows, W1 resident)
    s1 = pl.pallas_call(
        _xw_kernel,
        out_shape=jax.ShapeDtypeStruct((N_pad, Hp), cd),
        grid=(n_tiles,),
        in_specs=[row_tile(F), resident(F, Hp)],
        out_specs=row_tile(Hp),
        compiler_params=params,
    )(x_p, w1_p)

    # pass B: support2 = relu(adj @ support1 + b1) @ W2   (stream adj rows)
    s2 = pl.pallas_call(
        _layer1_kernel,
        out_shape=jax.ShapeDtypeStruct((N_pad, Cp), cd),
        grid=(n_tiles,),
        in_specs=[row_tile(N_pad), resident(N_pad, Hp),
                  resident(1, Hp), resident(Hp, Cp)],
        out_specs=row_tile(Cp),
        compiler_params=params,
    )(adj_p, s1, b1_p, w2_p)

    # pass C: out = log_softmax(adj @ support2 + b2)   (stream adj rows)
    out_p = pl.pallas_call(
        _layer2_kernel,
        out_shape=jax.ShapeDtypeStruct((N_pad, Cp), f32),
        grid=(n_tiles,),
        in_specs=[row_tile(N_pad), resident(N_pad, Cp), resident(1, Cp)],
        out_specs=row_tile(Cp),
        compiler_params=params,
    )(adj_p, s2, b2_p)

    return out_p[:N, :C]


def gcn_reference(x, adj, w1, b1, w2, b2):
    hi = jax.lax.Precision.HIGHEST
    dot = lambda a, b: jnp.dot(a, b, precision=hi)
    h1 = jnp.maximum(dot(adj, dot(x, w1)) + b1, 0.0)
    h2 = dot(adj, dot(h1, w2)) + b2
    return jax.nn.log_softmax(h2, axis=1)


if __name__ == "__main__":
    key = jax.random.PRNGKey(0)

    def make_inputs(k, N, nfeat, nhid, nclass, edge_p=0.3):
        kx, ka, kw1, kb1, kw2, kb2 = jax.random.split(k, 6)
        x = jax.random.normal(kx, (N, nfeat), dtype=jnp.float32)
        # Symmetric row/col-normalized adjacency with self loops (typical GCN).
        a = (jax.random.uniform(ka, (N, N)) < edge_p).astype(jnp.float32)
        a = jnp.maximum(a, a.T) + jnp.eye(N, dtype=jnp.float32)
        d = 1.0 / jnp.sqrt(jnp.sum(a, axis=1, keepdims=True))
        adj = d * a * d.T
        # GraphConvolution init: uniform(-stdv, stdv), stdv = 1/sqrt(out_features)
        s1 = 1.0 / jnp.sqrt(jnp.float32(nhid))
        w1 = jax.random.uniform(kw1, (nfeat, nhid), minval=-s1, maxval=s1, dtype=jnp.float32)
        b1 = jax.random.uniform(kb1, (1, nhid), minval=-s1, maxval=s1, dtype=jnp.float32)
        s2 = 1.0 / jnp.sqrt(jnp.float32(nclass))
        w2 = jax.random.uniform(kw2, (nhid, nclass), minval=-s2, maxval=s2, dtype=jnp.float32)
        b2 = jax.random.uniform(kb2, (1, nclass), minval=-s2, maxval=s2, dtype=jnp.float32)
        return x, adj, w1, b1, w2, b2

    k_small, k_big = jax.random.split(key)

    # --- small shapes consistent with the module (fused single-tile path) ---
    N, nfeat, nhid, nclass = 16, 32, 32, 8
    x, adj, w1, b1, w2, b2 = make_inputs(k_small, N, nfeat, nhid, nclass)
    ref = gcn_reference(x, adj, w1, b1, w2, b2)

    out_f32 = jax.block_until_ready(
        gcn_forward(x, adj, w1, b1, w2, b2, compute_dtype=jnp.float32))
    assert out_f32.shape == (N, nclass)
    assert jnp.allclose(out_f32, ref, atol=1e-3, rtol=1e-3), "f32 mismatch vs reference"

    out_bf16 = jax.block_until_ready(
        gcn_forward(x, adj, w1, b1, w2, b2, compute_dtype=jnp.bfloat16))
    assert out_bf16.shape == (N, nclass)
    assert jnp.allclose(out_bf16, ref, atol=5e-2, rtol=5e-2), "bf16 mismatch vs reference"

    # --- larger case to exercise multi-tile adj streaming (3 row tiles) ---
    N2, F2, H2, C2 = 300, 96, 64, 7
    x2, adj2, w12, b12, w22, b22 = make_inputs(k_big, N2, F2, H2, C2, edge_p=0.05)
    ref2 = gcn_reference(x2, adj2, w12, b12, w22, b22)
    out2 = jax.block_until_ready(
        gcn_forward(x2, adj2, w12, b12, w22, b22,
                    compute_dtype=jnp.float32, tile_rows=128))
    assert out2.shape == (N2, C2)
    assert jnp.allclose(out2, ref2, atol=2e-3, rtol=2e-3), "tiled f32 mismatch vs reference"

    print("KERNEL_OK")
</pallas_src>

<mosaic_0001>
module attributes {stable_mosaic.version = 11 : i64} {
  func.func @_fused_kernel(%arg0: i32, %arg1: memref<16x32xf32, #tpu.memory_space<vmem>>, %arg2: memref<16x16xf32, #tpu.memory_space<vmem>>, %arg3: memref<32x128xf32, #tpu.memory_space<vmem>>, %arg4: memref<1x128xf32, #tpu.memory_space<vmem>>, %arg5: memref<128x128xf32, #tpu.memory_space<vmem>>, %arg6: memref<1x128xf32, #tpu.memory_space<vmem>>, %arg7: memref<16x128xf32, #tpu.memory_space<vmem>>) attributes {dimension_semantics = [#tpu.dimension_semantics<arbitrary>], iteration_bounds = array<i64: 1>, scalar_prefetch = 0 : i64, scratch_operands = 0 : i64, tpu.core_type = #tpu.core_type<tc>, window_params = [{pipeline_mode = #tpu.pipeline_mode<synchronous>, transform_indices = @transform_0, window_bounds = array<i64: 16, 32>}, {pipeline_mode = #tpu.pipeline_mode<synchronous>, transform_indices = @transform_1, window_bounds = array<i64: 16, 16>}, {pipeline_mode = #tpu.pipeline_mode<synchronous>, transform_indices = @transform_2, window_bounds = array<i64: 32, 128>}, {pipeline_mode = #tpu.pipeline_mode<synchronous>, transform_indices = @transform_3, window_bounds = array<i64: 1, 128>}, {pipeline_mode = #tpu.pipeline_mode<synchronous>, transform_indices = @transform_4, window_bounds = array<i64: 128, 128>}, {pipeline_mode = #tpu.pipeline_mode<synchronous>, transform_indices = @transform_5, window_bounds = array<i64: 1, 128>}, {pipeline_mode = #tpu.pipeline_mode<synchronous>, transform_indices = @transform_6, window_bounds = array<i64: 16, 128>}]} {
    %c0 = arith.constant 0 : index
    %c0_0 = arith.constant 0 : index
    %0 = vector.load %arg1[%c0, %c0_0] : memref<16x32xf32, #tpu.memory_space<vmem>>, vector<16x32xf32>
    %c0_1 = arith.constant 0 : index
    %c0_2 = arith.constant 0 : index
    %1 = vector.load %arg3[%c0_1, %c0_2] : memref<32x128xf32, #tpu.memory_space<vmem>>, vector<32x128xf32>
    %cst = arith.constant dense<0.000000e+00> : vector<16x128xf32>
    %2 = tpu.matmul %0, %1, %cst {dimension_numbers = #tpu.dot_dimension_numbers<[1], [0], [0], [1], [0, 0, 1, 1], [], []>} : vector<16x32xf32>, vector<32x128xf32>, vector<16x128xf32> -> vector<16x128xf32>
    %c0_3 = arith.constant 0 : index
    %c0_4 = arith.constant 0 : index
    %3 = vector.load %arg2[%c0_3, %c0_4] : memref<16x16xf32, #tpu.memory_space<vmem>>, vector<16x16xf32>
    %cst_5 = arith.constant dense<0.000000e+00> : vector<16x128xf32>
    %4 = tpu.matmul %3, %2, %cst_5 {dimension_numbers = #tpu.dot_dimension_numbers<[1], [0], [0], [1], [0, 0, 1, 1], [], []>} : vector<16x16xf32>, vector<16x128xf32>, vector<16x128xf32> -> vector<16x128xf32>
    %c0_6 = arith.constant 0 : index
    %c0_7 = arith.constant 0 : index
    %5 = vector.load %arg4[%c0_6, %c0_7] : memref<1x128xf32, #tpu.memory_space<vmem>>, vector<1x128xf32>
    %6 = vector.broadcast %5 : vector<1x128xf32> to vector<16x128xf32>
    %7 = arith.addf %4, %6 : vector<16x128xf32>
    %cst_8 = arith.constant 0.000000e+00 : f32
    %8 = vector.broadcast %cst_8 : f32 to vector<16x128xf32>
    %9 = arith.maximumf %7, %8 : vector<16x128xf32>
    %c0_9 = arith.constant 0 : index
    %c0_10 = arith.constant 0 : index
    %10 = vector.load %arg5[%c0_9, %c0_10] : memref<128x128xf32, #tpu.memory_space<vmem>>, vector<128x128xf32>
    %cst_11 = arith.constant dense<0.000000e+00> : vector<16x128xf32>
    %11 = tpu.matmul %9, %10, %cst_11 {dimension_numbers = #tpu.dot_dimension_numbers<[1], [0], [0], [1], [0, 0, 1, 1], [], []>} : vector<16x128xf32>, vector<128x128xf32>, vector<16x128xf32> -> vector<16x128xf32>
    %c0_12 = arith.constant 0 : index
    %c0_13 = arith.constant 0 : index
    %12 = vector.load %arg2[%c0_12, %c0_13] : memref<16x16xf32, #tpu.memory_space<vmem>>, vector<16x16xf32>
    %cst_14 = arith.constant dense<0.000000e+00> : vector<16x128xf32>
    %13 = tpu.matmul %12, %11, %cst_14 {dimension_numbers = #tpu.dot_dimension_numbers<[1], [0], [0], [1], [0, 0, 1, 1], [], []>} : vector<16x16xf32>, vector<16x128xf32>, vector<16x128xf32> -> vector<16x128xf32>
    %c0_15 = arith.constant 0 : index
    %c0_16 = arith.constant 0 : index
    %14 = vector.load %arg6[%c0_15, %c0_16] : memref<1x128xf32, #tpu.memory_space<vmem>>, vector<1x128xf32>
    %15 = vector.broadcast %14 : vector<1x128xf32> to vector<16x128xf32>
    %16 = arith.addf %13, %15 : vector<16x128xf32>
    %cst_17 = arith.constant dense<0xFF800000> : vector<16xf32>
    %17 = vector.multi_reduction <maximumf>, %16, %cst_17 [1] : vector<16x128xf32> to vector<16xf32>
    %18 = vector.shape_cast %17 : vector<16xf32> to vector<16x1xf32>
    %19 = vector.broadcast %18 : vector<16x1xf32> to vector<16x128xf32>
    %20 = arith.subf %16, %19 : vector<16x128xf32>
    %21 = math.exp %20 : vector<16x128xf32>
    %cst_18 = arith.constant dense<0.000000e+00> : vector<16xf32>
    %22 = vector.multi_reduction <add>, %21, %cst_18 [1] : vector<16x128xf32> to vector<16xf32>
    %23 = vector.shape_cast %22 : vector<16xf32> to vector<16x1xf32>
    %24 = math.log %23 : vector<16x1xf32>
    %25 = vector.broadcast %24 : vector<16x1xf32> to vector<16x128xf32>
    %26 = arith.subf %20, %25 : vector<16x128xf32>
    %c0_19 = arith.constant 0 : index
    %c0_20 = arith.constant 0 : index
    %27 = vector.load %arg7[%c0_19, %c0_20] : memref<16x128xf32, #tpu.memory_space<vmem>>, vector<16x128xf32>
    tpu.vector_store %arg7[%c0_19, %c0_20], %26 {strides = array<i32>} : memref<16x128xf32, #tpu.memory_space<vmem>>, vector<16x128xf32>,
    return
  }
  func.func @transform_0(%arg0: i32) -> (i32, i32) {
    %c0_i32 = arith.constant 0 : i32
    %c0_i32_0 = arith.constant 0 : i32
    %c0_i32_1 = arith.constant 0 : i32
    return %c0_i32, %c0_i32_0 : i32, i32
  }
  func.func @transform_1(%arg0: i32) -> (i32, i32) {
    %c0_i32 = arith.constant 0 : i32
    %c0_i32_0 = arith.constant 0 : i32
    %c0_i32_1 = arith.constant 0 : i32
    return %c0_i32, %c0_i32_0 : i32, i32
  }
  func.func @transform_2(%arg0: i32) -> (i32, i32) {
    %c0_i32 = arith.constant 0 : i32
    %c0_i32_0 = arith.constant 0 : i32
    %c0_i32_1 = arith.constant 0 : i32
    return %c0_i32, %c0_i32_0 : i32, i32
  }
  func.func @transform_3(%arg0: i32) -> (i32, i32) {
    %c0_i32 = arith.constant 0 : i32
    %c0_i32_0 = arith.constant 0 : i32
    %c0_i32_1 = arith.constant 0 : i32
    return %c0_i32, %c0_i32_0 : i32, i32
  }
  func.func @transform_4(%arg0: i32) -> (i32, i32) {
    %c0_i32 = arith.constant 0 : i32
    %c0_i32_0 = arith.constant 0 : i32
    %c0_i32_1 = arith.constant 0 : i32
    return %c0_i32, %c0_i32_0 : i32, i32
  }
  func.func @transform_5(%arg0: i32) -> (i32, i32) {
    %c0_i32 = arith.constant 0 : i32
    %c0_i32_0 = arith.constant 0 : i32
    %c0_i32_1 = arith.constant 0 : i32
    return %c0_i32, %c0_i32_0 : i32, i32
  }
  func.func @transform_6(%arg0: i32) -> (i32, i32) {
    %c0_i32 = arith.constant 0 : i32
    %c0_i32_0 = arith.constant 0 : i32
    %c0_i32_1 = arith.constant 0 : i32
    return %c0_i32, %c0_i32_0 : i32, i32
  }
}

</mosaic_0001>

<bundles_post_ra>
// kernel: tpu_custom_call.1
= control target key start
LH: loop header
LB: loop body
LE: loop exit
PB: predicated region body
PF: predicated region fallthrough
CT: control target
= control target key end

     0   :  { %11 = vsyncpa [#allocation3], 0  ;;  %s896_s0 = inlined_call_operand.hbm [shape: f32[16,32], index: 0, kind: input, shape index: {}]   ;;  %s897_s1 = inlined_call_operand.hbm [shape: f32[16,16], index: 1, kind: input, shape index: {}]   ;;  %s898_s2 = inlined_call_operand.hbm [shape: f32[32,128], index: 2, kind: input, shape index: {}]   ;;  %s899_s3 = inlined_call_operand.vmem [shape: f32[1,128], index: 3, kind: input, shape index: {}]   ;;  %s900_s4 = inlined_call_operand.hbm [shape: f32[128,128], index: 4, kind: input, shape index: {}]   ;;  %s901_s5 = inlined_call_operand.vmem [shape: f32[1,128], index: 5, kind: input, shape index: {}]   ;;  %s902_s6 = inlined_call_operand.hbm [shape: f32[16,128], index: 6, kind: output, shape index: {}]  }
   0x1   :  { %12 = vsyncpa [#allocation6], 0 }
   0x2   :  { %13 = vsyncpa [#allocation9], 0 }
   0x3   :  { %14 = vsyncpa [#allocation4], 0  ;;  %s755_s21 = smov [#allocation5]   ;;  %s756_s23 = smov [#allocation2]  }
   0x4   :  { %s32_s22 = sshll.u32 %s755_s21, 4  ;;  %s20_s24 = sshll.u32 %s756_s23, 4  ;;  %s33_s22 = int_to_ptr.vmem [resolvable:$true] %s32_s22  ;;  %s797_s24 = int_to_ptr.vmem [resolvable:$true] %s20_s24 }
   0x5   :  { %s637_s27 = scalar_lea.hbm %s897_s1, 256 }
   0x6   :  { %p638_p0 = scmp.ne.s32.totalorder %s897_s1, %s637_s27  ;;  %p641_p1 = scmp.lt.u32.totalorder %s637_s27, %s897_s1 }
   0x8   :  { %p643_p2 = pnand %p641_p1, %p638_p0 }
   0xa   :  { %646 = shalt.err (!%p643_p2)
}
   0xb   :  { %s647_s8 = scalar_lea.vmem %s33_s22, 256  ;;  %p652_p4 = scmp.lt.s32.totalorder %s33_s22, %s33_s22 }
   0xc   :  { %p648_p3 = scmp.ne.s32.totalorder %s33_s22, %s647_s8  ;;  %p653_p5 = scmp.lt.s32.totalorder %s647_s8, %s647_s8 }
   0xe   :  { %p654_p6 = por %p653_p5, %p652_p4 }
  0x10   :  { %p655_p7 = pnand %p654_p6, %p648_p3 }
  0x12   :  { %658 = shalt.err (!%p655_p7)
}
  0x13   :  { %s757_s9 = smov 128   ;;  %s758_s10 = smov 8  }
  0x14   :  { %38 = dma.hbm_to_vmem [thread:$0]  %s897_s1, 256, %s33_s22, [#allocation6], %s757_s9, %s757_s9, %s758_s10  }
  0x15   :  { %s659_s15 = scalar_lea.hbm %s896_s0, 256 }
  0x16   :  { %p660_p8 = scmp.ne.s32.totalorder %s896_s0, %s659_s15  ;;  %p663_p9 = scmp.lt.u32.totalorder %s659_s15, %s896_s0 }
  0x18   :  { %p665_p10 = pnand %p663_p9, %p660_p8 }
  0x1a   :  { %668 = shalt.err (!%p665_p10)
}
  0x1b   :  { %s669_s20 = scalar_lea.vmem %s797_s24, 256  ;;  %p674_p12 = scmp.lt.s32.totalorder %s797_s24, %s797_s24 }
  0x1c   :  { %p670_p11 = scmp.ne.s32.totalorder %s797_s24, %s669_s20  ;;  %p675_p13 = scmp.lt.s32.totalorder %s669_s20, %s669_s20 }
  0x1e   :  { %p676_p0 = por %p675_p13, %p674_p12 }
  0x20   :  { %p677_p1 = pnand %p676_p0, %p670_p11 }
  0x22   :  { %680 = shalt.err (!%p677_p1)
}
  0x23   :  { %26 = dma.hbm_to_vmem [thread:$0]  %s896_s0, 256, %s797_s24, [#allocation3], %s757_s9, %s757_s9, %s758_s10  }
  0x24   :  { %s759_s22 = smov [#allocation7]   ;;  %s760_s25 = smov [#allocation8]  }
  0x25   :  { %s44_s23 = sshll.u32 %s759_s22, 4  ;;  %s58_s26 = sshll.u32 %s760_s25, 4  ;;  %s45_s23 = int_to_ptr.vmem [resolvable:$true] %s44_s23  ;;  %s834_s26 = int_to_ptr.vmem [resolvable:$true] %s58_s26 }
  0x26   :  { %s681_s29 = scalar_lea.hbm %s898_s2, 512 }
  0x27   :  { %p682_p2 = scmp.ne.s32.totalorder %s898_s2, %s681_s29  ;;  %p685_p3 = scmp.lt.u32.totalorder %s681_s29, %s898_s2 }
  0x29   :  { %p687_p4 = pnand %p685_p3, %p682_p2 }
  0x2b   :  { %690 = shalt.err (!%p687_p4)
}
  0x2c   :  { %s691_s0 = scalar_lea.vmem %s45_s23, 512  ;;  %p696_p6 = scmp.lt.s32.totalorder %s45_s23, %s45_s23 }
  0x2d   :  { %p692_p5 = scmp.ne.s32.totalorder %s45_s23, %s691_s0  ;;  %p697_p7 = scmp.lt.s32.totalorder %s691_s0, %s691_s0 }
  0x2f   :  { %p698_p8 = por %p697_p7, %p696_p6 }
  0x31   :  { %p699_p9 = pnand %p698_p8, %p692_p5 }
  0x33   :  { %702 = shalt.err (!%p699_p9)
}
  0x34   :  { %50 = dma.hbm_to_vmem [thread:$0]  %s898_s2, 512, %s45_s23, [#allocation6], %s757_s9, %s757_s9, %s758_s10  }
  0x35   :  { %s703_s15 = scalar_lea.hbm %s900_s4, 2048 }
  0x36   :  { %p704_p10 = scmp.ne.s32.totalorder %s900_s4, %s703_s15  ;;  %p707_p11 = scmp.lt.u32.totalorder %s703_s15, %s900_s4 }
  0x38   :  { %p709_p12 = pnand %p707_p11, %p704_p10 }
  0x3a   :  { %712 = shalt.err (!%p709_p12)
}
  0x3b   :  { %s713_s20 = scalar_lea.vmem %s834_s26, 2048  ;;  %p718_p0 = scmp.lt.s32.totalorder %s834_s26, %s834_s26 }
  0x3c   :  { %p714_p13 = scmp.ne.s32.totalorder %s834_s26, %s713_s20  ;;  %p719_p1 = scmp.lt.s32.totalorder %s713_s20, %s713_s20 }
  0x3e   :  { %p720_p2 = por %p719_p1, %p718_p0 }
  0x40   :  { %p721_p3 = pnand %p720_p2, %p714_p13 }
  0x42   :  { %724 = shalt.err (!%p721_p3)
}
  0x43   :  { %64 = dma.hbm_to_vmem [thread:$0]  %s900_s4, 2048, %s834_s26, [#allocation9], %s757_s9, %s757_s9, %s758_s10  }
  0x44   :  { %747 = dma.done.wait [#allocation3], 256  }
  0x45   :  { %748 = vsyncadd [#allocation3], 4294967040 }
  0x46   :  { %749 = dma.done.wait [#allocation6], 768  }
  0x47   :  { %750 = vsyncadd [#allocation6], 4294966528 }
  0x48   :  { %751 = dma.done.wait [#allocation9], 2048  }
  0x49   :  { %752 = vsyncadd [#allocation9], 4294965248  ;;  %vm85_vm0 = vcmask 261120   ;;  %v81_v0 = vld [vmem:[#allocation7] sm:$0xff]  ;;  %v82_v1 = vld [vmem:[#allocation7 + $0x8] sm:$0xff]  ;;  %vm176_vm1 = vcmask 130048  }
  0x4a   :  { %v83_v2 = vld [vmem:[#allocation7 + $0x10] sm:$0xff]  ;;  %v574_v3 = vpack.c.bf16 %v82_v1, %v81_v0  ;;  %v84_v4 = vld [vmem:[#allocation7 + $0x18] sm:$0xff]  ;;  %v79_v5 = vld [vmem:[#allocation2] sm:$0xff] }
  0x4b   :  { %v578_v6 = vpack.c.bf16 %v84_v4, %v83_v2  ;;  %522 = vmatprep.mubr.msk.f32.mxu0 %vm85_vm0, %v79_v5  ;;  %v80_v7 = vld [vmem:[#allocation2 + $0x8] sm:$0xff]  ;;  %v167_v8 = vld [vmem:[#allocation5] sm:$0xff]  ;;  %v260_v9 = vld [vmem:[#allocation8] sm:$0xff] }
  0x4c   :  { %575 = vmatprep.subr.bf16.mxu0 %v574_v3  ;;  %v261_v10 = vld [vmem:[#allocation8 + $0x8] sm:$0xff]  ;;  %v262_v11 = vld [vmem:[#allocation8 + $0x10] sm:$0xff]  ;;  %v263_v13 = vld [vmem:[#allocation8 + $0x18] sm:$0xff] }
  0x4d   :  { %577 = vmatpush3.bf16.msra.mxu0 %v574_v3  ;;  %v586_v12 = vpack.c.bf16 %v261_v10, %v260_v9  ;;  %v590_v14 = vpack.c.bf16 %v263_v13, %v262_v11  ;;  %v264_v15 = vld [vmem:[#allocation8 + $0x20] sm:$0xff]  ;;  %v265_v16 = vld [vmem:[#allocation8 + $0x28] sm:$0xff]  ;;  %v266_v18 = vld [vmem:[#allocation8 + $0x30] sm:$0xff] }
  0x4e   :  { %579 = vmatprep.subr.bf16.mxu0 %v578_v6  ;;  %v594_v17 = vpack.c.bf16 %v265_v16, %v264_v15  ;;  %v267_v19 = vld [vmem:[#allocation8 + $0x38] sm:$0xff]  ;;  %v268_v21 = vld [vmem:[#allocation8 + $0x40] sm:$0xff]  ;;  %v269_v22 = vld [vmem:[#allocation8 + $0x48] sm:$0xff] }
  0x4f   :  { %587 = vmatprep.subr.bf16.mxu1 %v586_v12  ;;  %v598_v20 = vpack.c.bf16 %v267_v19, %v266_v18  ;;  %v602_v23 = vpack.c.bf16 %v269_v22, %v268_v21  ;;  %v270_v24 = vld [vmem:[#allocation8 + $0x50] sm:$0xff]  ;;  %v271_v25 = vld [vmem:[#allocation8 + $0x58] sm:$0xff]  ;;  %v272_v27 = vld [vmem:[#allocation8 + $0x60] sm:$0xff] }
  0x50   :  { %589 = vmatpush3.bf16.msra.mxu1 %v586_v12  ;;  %v606_v26 = vpack.c.bf16 %v271_v25, %v270_v24  ;;  %v273_v28 = vld [vmem:[#allocation8 + $0x68] sm:$0xff]  ;;  %v168_v33 = vld [vmem:[#allocation5 + $0x8] sm:$0xff]  ;;  %v274_v34 = vld [vmem:[#allocation8 + $0x70] sm:$0xff] }
  0x51   :  { %581 = vmatpush3.bf16.msra.mxu0 %v578_v6  ;;  %591 = vmatprep.subr.bf16.mxu1 %v590_v14  ;;  %v610_v29 = vpack.c.bf16 %v273_v28, %v272_v27  ;;  %v275_v35 = vld [vmem:[#allocation8 + $0x78] sm:$0xff]  ;;  %v476_v37 = vld [vmem:[%s899_s3] ss:$0 sm:$0xff]  ;;  %s761_s3 = smov [#allocation10]  }
  0x52   :  { %v614_v36 = vpack.c.bf16 %v275_v35, %v274_v34  ;;  %v479_v47 = vld [vmem:[%s901_s5] ss:$0 sm:$0xff]  ;;  %s460_s5 = sshll.u32 %s761_s3, 4  ;;  %s461_s5 = int_to_ptr.vmem [resolvable:$true] %s460_s5 }
  0x53   :  { %s725_s25 = scalar_lea.vmem %s461_s5, 256  ;;  %p730_p5 = scmp.lt.s32.totalorder %s461_s5, %s461_s5 }
  0x54   :  { %523 = vmatmul.mubr.msk.f32.vlgmr.msra.gmra.mrb[0].mxu0 %vm85_vm0, %v80_v7  ;;  %593 = vmatpush3.bf16.msra.mxu1 %v590_v14  ;;  %p726_p4 = scmp.ne.s32.totalorder %s461_s5, %s725_s25  ;;  %p731_p6 = scmp.lt.s32.totalorder %s725_s25, %s725_s25 }
  0x55   :  { %529 = vmatprep.mubr.msk.f32.mxu0 %vm176_vm1, %v167_v8  ;;  %595 = vmatprep.subr.bf16.mxu1 %v594_v17 }
  0x56   :  { %p732_p7 = por %p731_p6, %p730_p5 }
  0x58   :  { %597 = vmatpush3.bf16.msra.mxu1 %v594_v17  ;;  %p733_p8 = pnand %p732_p7, %p726_p4 }
  0x59   :  { %599 = vmatprep.subr.bf16.mxu1 %v598_v20 }
  0x5c   :  { %601 = vmatpush3.bf16.msra.mxu1 %v598_v20 }
  0x5d   :  { %603 = vmatprep.subr.bf16.mxu1 %v602_v23 }
  0x60   :  { %605 = vmatpush3.bf16.msra.mxu1 %v602_v23 }
  0x61   :  { %607 = vmatprep.subr.bf16.mxu1 %v606_v26 }
  0x64   :  { %609 = vmatpush3.bf16.msra.mxu1 %v606_v26 }
  0x65   :  { %611 = vmatprep.subr.bf16.mxu1 %v610_v29 }
  0x68   :  { %613 = vmatpush3.bf16.msra.mxu1 %v610_v29 }
  0x69   :  { %615 = vmatprep.subr.bf16.mxu1 %v614_v36 }
  0x6c   :  { %617 = vmatpush3.bf16.msra.mxu1 %v614_v36 }
 0x127   :  { %v524_v30 = vpop.f32.mrb[0].mxu0 }
 0x128   :  { %v158_v31 = vpop.f32.mrb[1].mxu0 }
 0x129   :  { %v582_v32 = vpack.c.bf16 %v524_v30, %v158_v31 }
 0x12b   :  { %583 = vmatprep.subr.bf16.mxu0 %v582_v32 }
 0x12c   :  { %585 = vmatpush3.bf16.msra.mxu0 %v582_v32 }
 0x12f   :  { %530 = vmatmul.mubr.msk.f32.vlgmr.msra.gmra.mrb[2].mxu0 %vm176_vm1, %v168_v33 }
 0x130   :  { %571 = vmatprep.mubr.msk.f32.mxu0 %vm176_vm1, %v167_v8 }
 0x202   :  { %v531_v38 = vpop.f32.mrb[2].mxu0 }
 0x203   :  { %v255_v39 = vadd.f32 %v531_v38, %v476_v37  ;;  %v249_v40 = vpop.f32.mrb[3].mxu0 }
 0x204   :  { %v250_v41 = vadd.f32 %v476_v37, %v249_v40 }
 0x205   :  { %v259_v43 = vmax.f32 %v255_v39, 0.0 }
 0x206   :  { %v258_v42 = vmax.f32 %v250_v41, 0.0 }
 0x208   :  { %564 = vmatprep.mubr.f32.mxu1 %v258_v42 }
 0x209   :  { %565 = vmatmul.mubr.f32.vlgmr.msra.gmra.mrb[0].mxu1 %v259_v43 }
 0x2dc   :  { %v566_v44 = vpop.f32.mrb[0].mxu1 }
 0x2dd   :  { %v342_v45 = vpop.f32.mrb[1].mxu1 }
 0x2de   :  { %v618_v46 = vpack.c.bf16 %v566_v44, %v342_v45 }
 0x2e0   :  { %619 = vmatprep.subr.bf16.mxu0 %v618_v46 }
 0x2e1   :  { %621 = vmatpush3.bf16.msra.mxu0 %v618_v46 }
 0x2e4   :  { %572 = vmatmul.mubr.msk.f32.vlgmr.msra.gmra.mrb[4].mxu0 %vm176_vm1, %v168_v33 }
 0x3b7   :  { %v573_v48 = vpop.f32.mrb[4].mxu0 }
 0x3b8   :  { %v424_v49 = vpop.f32.mrb[5].mxu0  ;;  %v430_v51 = vadd.f32 %v573_v48, %v479_v47 }
 0x3b9   :  { %v425_v50 = vadd.f32 %v479_v47, %v424_v49 }
 0x3bb   :  { %433 = vmax.xlane.f32.xlu0 %v425_v50 }
 0x3bf   :  { %435 = vmax.xlane.f32.xlu0 %v430_v51 }
 0x448   :  { %v434_v52 = vpop.xlane.xlu0 %433 }
 0x449   :  { %v437_v53 = vsub.f32 %v425_v50, %v434_v52 }
 0x44b   :  { %v439_v54 = vmul.f32 1.442695, %v437_v53 }
 0x44c   :  { %v436_v55 = vpop.xlane.xlu0 %435 }
 0x44d   :  { %v438_v56 = vsub.f32 %v430_v51, %v436_v55  ;;  %629 = vpow2.f32 %v439_v54 }
 0x44f   :  { %v441_v57 = vmul.f32 1.442695, %v438_v56 }
 0x451   :  { %631 = vpow2.f32 %v441_v57 }
 0x457   :  { %v630_v58 = vpop.eup %629 }
 0x458   :  { %443 = vadd.xlane.f32.xlu1 %v630_v58 }
 0x45b   :  { %v632_v59 = vpop.eup %631 }
 0x45c   :  { %445 = vadd.xlane.f32.xlu1 %v632_v59 }
 0x4e5   :  { %v444_v60 = vpop.xlane.xlu1 %443 }
 0x4e6   :  { %633 = vlog2.f32 %v444_v60 }
 0x4e9   :  { %v446_v61 = vpop.xlane.xlu1 %445 }
 0x4ea   :  { %635 = vlog2.f32 %v446_v61 }
 0x4f0   :  { %v634_v62 = vpop.eup %633 }
 0x4f1   :  { %v448_v63 = vmul.f32 0.6931472, %v634_v62 }
 0x4f3   :  { %v451_v0 = vsub.f32 %v437_v53, %v448_v63 }
 0x4f4   :  { %v636_v1 = vpop.eup %635 }
 0x4f5   :  { %453 = vst [vmem:[#allocation10] sm:$0xff] %v451_v0  ;;  %v450_v2 = vmul.f32 0.6931472, %v636_v1 }
 0x4f7   :  { %v452_v3 = vsub.f32 %v438_v56, %v450_v2 }
 0x4f9   :  { %454 = vst [vmem:[#allocation10 + $0x8] sm:$0xff] %v452_v3 }
 0x4fa   :  { %736 = shalt.err (!%p733_p8)
}
 0x4fb   :  { %s737_s28 = scalar_lea.hbm %s902_s6, 256 }
 0x4fc   :  { %p738_p9 = scmp.ne.s32.totalorder %s902_s6, %s737_s28  ;;  %p741_p10 = scmp.lt.u32.totalorder %s737_s28, %s902_s6 }
 0x4fe   :  { %p743_p11 = pnand %p741_p10, %p738_p9 }
 0x500   :  { %746 = shalt.err (!%p743_p11)
}
 0x501   :  { %466 = dma.vmem_to_hbm [thread:$0]  %s461_s5, 256, %s902_s6, [#allocation4], %s757_s9, %s757_s9, %s758_s10  }
 0x502   :  { %753 = dma.done.wait [#allocation4], 256  }
 0x503   :  { %754 = vsyncadd [#allocation4], 4294967040 }
 0x504   :  { %470 = vsyncpa [#allocation3], 1 }
 0x505   :  { %471 = vsyncpa [#allocation6], 1 }
 0x506   :  { %472 = vsyncpa [#allocation9], 1 }
 0x507   :  { %473 = vsyncpa [#allocation4], 1 }

</bundles_post_ra>
